<compile_context>
chip_gen: v7x
topology: tpu7x:2x2x1
jax: 0.10.0
libtpu: 0.0.40
codegen_flags: <defaults>
</compile_context>

<pallas_src>
import jax
import jax.numpy as jnp
from jax.experimental import pallas as pl
from jax.experimental.pallas import tpu as pltpu


def _round_up(x, m):
    return ((x + m - 1) // m) * m


def _pick_tile(size, unit, max_tile):
    """Largest tile (multiple of `unit`, <= max_tile) minimizing padded total."""
    size_u = _round_up(size, unit)
    hi = max(unit, min((max_tile // unit) * unit, size_u))
    best_t, best_tot = unit, size_u
    t = unit
    while t <= hi:
        tot = _round_up(size, t)
        if tot < best_tot or (tot == best_tot and t > best_t):
            best_t, best_tot = t, tot
        t += unit
    return best_t


def _make_kernel(tile_b):
    n_slab = tile_b // 8

    def kernel(pred_ref, gt_ref, mask_ref, out_ref, acc_ref):
        i = pl.program_id(1)          # row-block index   (reduction)
        j = pl.program_id(2)          # lane-block index  (reduction)

        @pl.when(jnp.logical_and(i == 0, j == 0))
        def _init():
            acc_ref[...] = jnp.zeros_like(acc_ref)

        # Per 8-row slab: masked diff, square, accumulate into VMEM scratch.
        # Everything is re-loaded per slab (no long-lived vreg values), so
        # register pressure stays tiny for any tile_l; the extra VMEM traffic
        # is fully hidden under the HBM roofline.
        for r in range(n_slab):
            sl = slice(r * 8, (r + 1) * 8)
            d = (pred_ref[sl, :] - gt_ref[sl, :]) * mask_ref[...]
            acc_ref[...] += d * d

        @pl.when(jnp.logical_and(i == pl.num_programs(1) - 1,
                                 j == pl.num_programs(2) - 1))
        def _fin():
            # One cross-lane reduce + one scalar store per parallel chunk.
            out_ref[...] = jnp.sum(acc_ref[...]).reshape(1, 1, 1)

    return kernel


_BLOCK_ELEMS = 512 * 1024   # ~2 MiB f32 per pred/gt input block


def mask_mse_loss(density_pred, density_gt, mask):
    """density_pred / density_gt: (N, C, H, W); mask: (H, W) binary float.

    Returns scalar f32 = mean(((pred - gt) * mask)^2) over all N*C*H*W elems.
    """
    n, c, h, w = density_pred.shape
    assert density_gt.shape == density_pred.shape
    assert mask.shape == (h, w)

    total = n * c * h * w
    b = n * c
    l0 = h * w

    # ---- layout: fold tiny row counts, lane-dense padding -----------------
    f = 8 // b if (b < 8 and 8 % b == 0) else 1      # fold factor (1,2,4,8)
    l_img = _round_up(l0, f * 128)                   # per-image lane padding
    fw = l_img // f                                  # folded width (mult of 128)
    rows = b * f
    rows8 = _round_up(rows, 8)

    tile_b = _pick_tile(rows8, 8, 256)
    rows_pad = _round_up(rows8, tile_b)

    lane_cap = 32768 if tile_b == 8 else 8192
    lane_budget = max(128, min(lane_cap, (_BLOCK_ELEMS // tile_b) // 128 * 128))
    tile_l = _pick_tile(fw, 128, lane_budget)
    l_pad = _round_up(fw, tile_l)

    def _prep(x):
        # pred/gt padded identically with zeros => (pred-gt)=0 in all padding,
        # so padded regions contribute nothing regardless of mask content.
        x = jnp.pad(x.reshape(b, l0).astype(jnp.float32),
                    ((0, 0), (0, l_img - l0)))
        x = x.reshape(rows, fw)                       # contiguous (free) fold
        return jnp.pad(x, ((0, rows_pad - rows), (0, l_pad - fw)))

    pred2 = _prep(density_pred)
    gt2 = _prep(density_gt)

    # 8-sublane mask strip matching the (possibly folded) row layout.
    mrow = jnp.pad(mask.reshape(1, l0).astype(jnp.float32),
                   ((0, 0), (0, l_img - l0)))
    mask8 = jnp.pad(jnp.tile(mrow.reshape(f, fw), (8 // f, 1)),
                    ((0, 0), (0, l_pad - fw)))

    nb_total = rows_pad // tile_b
    nl_total = l_pad // tile_l

    # 2-way parallel leading axis (megacore on v7x, neutral on v5e/v6e),
    # placed on whichever reduction axis has more (and evenly splittable) blocks.
    p, split_rows = 1, True
    if (nb_total % 2 == 0 and nb_total >= 2
            and (nb_total >= nl_total or nl_total % 2 != 0)):
        p, split_rows = 2, True
    elif nl_total % 2 == 0 and nl_total >= 2:
        p, split_rows = 2, False

    nb = nb_total // 2 if (p == 2 and split_rows) else nb_total
    nl = nl_total // 2 if (p == 2 and not split_rows) else nl_total

    if split_rows:
        data_map = lambda pi, i, j: (pi * nb + i, j)
        mask_map = lambda pi, i, j: (0, j)
    else:
        data_map = lambda pi, i, j: (i, pi * nl + j)
        mask_map = lambda pi, i, j: (0, pi * nl + j)

    kernel = _make_kernel(tile_b)

    partials = pl.pallas_call(
        kernel,
        out_shape=jax.ShapeDtypeStruct((p, 1, 1), jnp.float32),
        grid_spec=pltpu.PrefetchScalarGridSpec(
            num_scalar_prefetch=0,
            grid=(p, nb, nl),
            in_specs=[
                pl.BlockSpec((tile_b, tile_l), data_map),   # pred
                pl.BlockSpec((tile_b, tile_l), data_map),   # gt
                pl.BlockSpec((8, tile_l), mask_map),        # shared mask strip
            ],
            out_specs=pl.BlockSpec((1, 1, 1), lambda pi, i, j: (pi, 0, 0)),
            scratch_shapes=[pltpu.VMEM((8, tile_l), jnp.float32)],
        ),
        compiler_params=pltpu.CompilerParams(
            dimension_semantics=("parallel", "arbitrary", "arbitrary"),
        ),
        cost_estimate=pl.CostEstimate(
            flops=4 * total,
            transcendentals=0,
            bytes_accessed=(2 * total + l0) * 4 + 4 * p,
        ),
    )(pred2, gt2, mask8)

    # 'mean' over the ORIGINAL N*C*H*W elements (padding adds exactly zero).
    return jnp.sum(partials) / jnp.float32(total)


if __name__ == "__main__":
    def run_case(n, c, h, w, key):
        k_pred, k_gt, k_mask = jax.random.split(key, 3)
        pred = jax.random.uniform(k_pred, (n, c, h, w), dtype=jnp.float32)
        gt = jax.random.uniform(k_gt, (n, c, h, w), dtype=jnp.float32)
        # Deterministic synthetic binary mask (stands in for cv2 imread/resize).
        msk = (jax.random.uniform(k_mask, (h, w)) > 0.5).astype(jnp.float32)

        loss = jax.jit(mask_mse_loss)(pred, gt, msk)
        loss = jax.block_until_ready(loss)

        ref = jnp.mean(((pred * msk) - (gt * msk)) ** 2)
        assert jnp.allclose(loss, ref, rtol=1e-4, atol=1e-6), (n, c, h, w, loss, ref)
        return loss

    weight = 1.0            # stored by the module but unused in forward
    input_size = (16, 16)

    # Primary small case consistent with the module (fold path: b=2 -> f=4).
    run_case(2, 1, input_size[0], input_size[1], jax.random.PRNGKey(0))
    # Ragged spatial size (lane zero-padding path), b == 8 exactly.
    run_case(2, 4, 10, 13, jax.random.PRNGKey(1))
    # Multi row/lane blocks + 2-way parallel row split (divisor-friendly lanes).
    run_case(8, 64, 48, 48, jax.random.PRNGKey(2))
    # b = 6: pad-to-8 fallback path, single large block.
    run_case(2, 3, 48, 64, jax.random.PRNGKey(3))
    # Fold path with f = 2 and larger spatial plane.
    run_case(4, 1, 64, 96, jax.random.PRNGKey(4))

    print("KERNEL_OK")
</pallas_src>

<mosaic_0001>
module attributes {stable_mosaic.version = 11 : i64} {
  func.func @kernel(%arg0: i32, %arg1: i32, %arg2: i32, %arg3: memref<8x128xf32, #tpu.memory_space<vmem>>, %arg4: memref<8x128xf32, #tpu.memory_space<vmem>>, %arg5: memref<8x128xf32, #tpu.memory_space<vmem>>, %arg6: memref<1x1x1xf32, #tpu.memory_space<vmem>>, %arg7: memref<8x128xf32, #tpu.memory_space<vmem>>) attributes {dimension_semantics = [#tpu.dimension_semantics<parallel>, #tpu.dimension_semantics<arbitrary>, #tpu.dimension_semantics<arbitrary>], iteration_bounds = array<i64: 1, 1, 1>, scalar_prefetch = 0 : i64, scratch_operands = 1 : i64, tpu.core_type = #tpu.core_type<tc>, window_params = [{transform_indices = @transform_0, window_bounds = array<i64: 8, 128>}, {transform_indices = @transform_1, window_bounds = array<i64: 8, 128>}, {transform_indices = @transform_2, window_bounds = array<i64: 8, 128>}, {transform_indices = @transform_3, window_bounds = array<i64: 1, 1, 1>}]} {
    %c0_i32 = arith.constant 0 : i32
    %0 = arith.cmpi eq, %arg1, %c0_i32 : i32
    %c0_i32_0 = arith.constant 0 : i32
    %1 = arith.cmpi eq, %arg2, %c0_i32_0 : i32
    %2 = arith.andi %0, %1 : i1
    %3 = arith.extui %2 : i1 to i32
    %c0_i32_1 = arith.constant 0 : i32
    %4 = arith.cmpi ne, %3, %c0_i32_1 : i32
    scf.if %4 {
      %cst = arith.constant 0.000000e+00 : f32
      %19 = vector.broadcast %cst : f32 to vector<8x128xf32>
      %c0_14 = arith.constant 0 : index
      %c0_15 = arith.constant 0 : index
      %20 = vector.load %arg7[%c0_14, %c0_15] : memref<8x128xf32, #tpu.memory_space<vmem>>, vector<8x128xf32>
      tpu.vector_store %arg7[%c0_14, %c0_15], %19 {strides = array<i32>} : memref<8x128xf32, #tpu.memory_space<vmem>>, vector<8x128xf32>,
    } else {
    }
    %c0 = arith.constant 0 : index
    %c0_2 = arith.constant 0 : index
    %5 = vector.load %arg3[%c0, %c0_2] : memref<8x128xf32, #tpu.memory_space<vmem>>, vector<8x128xf32>
    %c0_3 = arith.constant 0 : index
    %c0_4 = arith.constant 0 : index
    %6 = vector.load %arg4[%c0_3, %c0_4] : memref<8x128xf32, #tpu.memory_space<vmem>>, vector<8x128xf32>
    %7 = arith.subf %5, %6 : vector<8x128xf32>
    %c0_5 = arith.constant 0 : index
    %c0_6 = arith.constant 0 : index
    %8 = vector.load %arg5[%c0_5, %c0_6] : memref<8x128xf32, #tpu.memory_space<vmem>>, vector<8x128xf32>
    %9 = arith.mulf %7, %8 : vector<8x128xf32>
    %c0_7 = arith.constant 0 : index
    %c0_8 = arith.constant 0 : index
    %10 = vector.load %arg7[%c0_7, %c0_8] : memref<8x128xf32, #tpu.memory_space<vmem>>, vector<8x128xf32>
    %11 = arith.mulf %9, %9 : vector<8x128xf32>
    %12 = arith.addf %10, %11 : vector<8x128xf32>
    %c0_9 = arith.constant 0 : index
    %c0_10 = arith.constant 0 : index
    %13 = vector.load %arg7[%c0_9, %c0_10] : memref<8x128xf32, #tpu.memory_space<vmem>>, vector<8x128xf32>
    tpu.vector_store %arg7[%c0_9, %c0_10], %12 {strides = array<i32>} : memref<8x128xf32, #tpu.memory_space<vmem>>, vector<8x128xf32>,
    %c0_i32_11 = arith.constant 0 : i32
    %14 = arith.cmpi eq, %arg1, %c0_i32_11 : i32
    %c0_i32_12 = arith.constant 0 : i32
    %15 = arith.cmpi eq, %arg2, %c0_i32_12 : i32
    %16 = arith.andi %14, %15 : i1
    %17 = arith.extui %16 : i1 to i32
    %c0_i32_13 = arith.constant 0 : i32
    %18 = arith.cmpi ne, %17, %c0_i32_13 : i32
    scf.if %18 {
      %c0_14 = arith.constant 0 : index
      %c0_15 = arith.constant 0 : index
      %19 = vector.load %arg7[%c0_14, %c0_15] : memref<8x128xf32, #tpu.memory_space<vmem>>, vector<8x128xf32>
      %20 = vector.shape_cast %19 : vector<8x128xf32> to vector<1x8x128xf32>
      %cst = arith.constant dense<0.000000e+00> : vector<1xf32>
      %21 = vector.multi_reduction <add>, %20, %cst [1, 2] : vector<1x8x128xf32> to vector<1xf32>
      %22 = vector.shape_cast %21 : vector<1xf32> to vector<1x1x1xf32>
      %23 = vector.extract %22[0, 0, 0] : f32 from vector<1x1x1xf32>
      %24 = vector.broadcast %23 : f32 to vector<1x1x1xf32>
      %c0_16 = arith.constant 0 : index
      %c0_17 = arith.constant 0 : index
      %c0_18 = arith.constant 0 : index
      %25 = vector.load %arg6[%c0_16, %c0_17, %c0_18] : memref<1x1x1xf32, #tpu.memory_space<vmem>>, vector<1x1x1xf32>
      tpu.vector_store %arg6[%c0_16, %c0_17, %c0_18], %24 {strides = array<i32>} : memref<1x1x1xf32, #tpu.memory_space<vmem>>, vector<1x1x1xf32>,
    } else {
    }
    return
  }
  func.func @transform_0(%arg0: i32, %arg1: i32, %arg2: i32) -> (i32, i32) {
    %c1_i32 = arith.constant 1 : i32
    %0 = arith.muli %arg0, %c1_i32 : i32
    %1 = arith.addi %0, %arg1 : i32
    %c0_i32 = arith.constant 0 : i32
    return %1, %arg2 : i32, i32
  }
  func.func @transform_1(%arg0: i32, %arg1: i32, %arg2: i32) -> (i32, i32) {
    %c1_i32 = arith.constant 1 : i32
    %0 = arith.muli %arg0, %c1_i32 : i32
    %1 = arith.addi %0, %arg1 : i32
    %c0_i32 = arith.constant 0 : i32
    return %1, %arg2 : i32, i32
  }
  func.func @transform_2(%arg0: i32, %arg1: i32, %arg2: i32) -> (i32, i32) {
    %c0_i32 = arith.constant 0 : i32
    %c0_i32_0 = arith.constant 0 : i32
    return %c0_i32, %arg2 : i32, i32
  }
  func.func @transform_3(%arg0: i32, %arg1: i32, %arg2: i32) -> (i32, i32, i32) {
    %c0_i32 = arith.constant 0 : i32
    %c0_i32_0 = arith.constant 0 : i32
    %c0_i32_1 = arith.constant 0 : i32
    return %arg0, %c0_i32, %c0_i32_0 : i32, i32, i32
  }
}

</mosaic_0001>

<bundles_post_ra>
// kernel: mask_mse_loss.1
= control target key start
LH: loop header
LB: loop body
LE: loop exit
PB: predicated region body
PF: predicated region fallthrough
CT: control target
= control target key end

     0   :  { %s175_s0 = inlined_call_operand.vmem [shape: f32[8,128], index: 0, kind: input, shape index: {}]   ;;  %s176_s1 = inlined_call_operand.vmem [shape: f32[8,128], index: 1, kind: input, shape index: {}]   ;;  %s177_s2 = inlined_call_operand.vmem [shape: f32[8,128], index: 2, kind: input, shape index: {}]   ;;  %s178_s3 = inlined_call_operand.hbm [shape: f32[1,1,1], index: 3, kind: output, shape index: {}]  }
   0x1   :  { %v56_v0 = vld [vmem:[%s175_s0] sm:$0xff] }
   0x2   :  { %v57_v1 = vld [vmem:[%s176_s1] sm:$0xff] }
   0x3   :  { %v59_v2 = vld [vmem:[%s177_s2] sm:$0xff]  ;;  %v58_v3 = vsub.f32 %v56_v0, %v57_v1 }
   0x4   :  { %8 = vsyncpa [#allocation4], 0  ;;  %s133_s0 = smov [#allocation3]   ;;  %vm78_vm0 = vcmask 0  }
   0x5   :  { %v60_v4 = vmul.f32 %v59_v2, %v58_v3  ;;  %s86_s18 = sshll.u32 %s133_s0, 4  ;;  %s87_s18 = int_to_ptr.vmem [resolvable:$true] %s86_s18 }
   0x6   :  { %s109_s2 = scalar_lea.vmem %s87_s18, 16  ;;  %s113_s19 = scalar_lea.vmem %s87_s18, 32 }
   0x7   :  { %v62_v5 = vmul.f32 %v60_v4, %v60_v4  ;;  %p110_p0 = scmp.ne.s32.totalorder %s87_s18, %s109_s2  ;;  %p114_p1 = scmp.lt.s32.totalorder %s87_s18, %s87_s18 }
   0x8   :  { %p115_p2 = scmp.lt.s32.totalorder %s113_s19, %s109_s2 }
   0x9   :  { %68 = vadd.xlane.f32.xlu0 %v62_v5 }
   0xa   :  { %p116_p3 = por %p115_p2, %p114_p1 }
   0xc   :  { %p117_p4 = pnand %p116_p3, %p110_p0 }
  0x96   :  { %v69_v6 = vpop.xlane.xlu0 %68 }
  0x97   :  { %v70_v7 = vrot.slane %v69_v6, 4 }
  0x99   :  { %v71_v8 = vadd.f32 %v70_v7, %v69_v6 }
  0x9b   :  { %v72_v9 = vrot.slane %v71_v8, 2 }
  0x9d   :  { %v73_v10 = vadd.f32 %v72_v9, %v71_v8 }
  0x9f   :  { %v74_v11 = vrot.slane %v73_v10, 1 }
  0xa1   :  { %v75_v12 = vadd.f32 %v74_v11, %v73_v10 }
  0xa3   :  { %106 = vpush %v75_v12 }
  0xd4   :  { %s107_s1 = spop %106 }
  0xd5   :  { %v77_v13 = vstv %s107_s1 }
  0xd6   :  { %79 = vst.msk [vmem:[#allocation3] sm:$0x1] %vm78_vm0, %v77_v13 }
  0xd7   :  { %120 = shalt.err (!%p117_p4)
}
  0xd8   :  { %s121_s22 = scalar_lea.hbm %s178_s3, 16 }
  0xd9   :  { %p122_p5 = scmp.ne.s32.totalorder %s178_s3, %s121_s22  ;;  %p125_p6 = scmp.lt.u32.totalorder %s121_s22, %s178_s3 }
  0xdb   :  { %p127_p7 = pnand %p125_p6, %p122_p5 }
  0xdd   :  { %130 = shalt.err (!%p127_p7)
}
  0xde   :  { %89 = dma.vmem_to_hbm [thread:$0]  %s87_s18, 16, %s178_s3, [#allocation4]  }
  0xdf   :  { %131 = dma.done.wait [#allocation4], 16  }
  0xe0   :  { %132 = vsyncadd [#allocation4], 4294967280 }
  0xe1   :  { %93 = vsyncpa [#allocation4], 1 }

</bundles_post_ra>
